<compile_context>
chip_gen: v6e
topology: v6e:2x2x1
jax: 0.10.0
libtpu: 0.0.40
codegen_flags: <defaults>
</compile_context>

<pallas_src>
import functools

import jax
import jax.numpy as jnp
from jax import lax
from jax.experimental import pallas as pl
from jax.experimental.pallas import tpu as pltpu


# ------------------------------ tile pickers ---------------------------------
def _pick_sub_tile(total, preferred):
    """Second-to-last (sublane) axis tile: divides `total`, multiple of 8 when
    possible, else the full extent (both legal)."""
    for t in (preferred, 512, 256, 128, 64, 32, 16, 8):
        if t <= total and total % t == 0:
            return t
    return total


def _pick_lane_tile(total, preferred):
    """Last (lane) axis tile: multiple of 128 dividing `total`, else the full
    extent (both satisfy the TPU (8,128) block rule)."""
    for t in (preferred, 1024, 512, 256, 128):
        if t <= total and total % t == 0:
            return t
    return total


def _head_group_width(dim, dim_head):
    """Lane width of one head group in the packed (h*d) layout."""
    if dim_head % 128 == 0:
        return dim_head                    # one head per group, lane-aligned
    if dim % 128 == 0 and 128 % dim_head == 0:
        return 128                         # small group, lane-dense, short unroll
    return dim                             # full width fallback (dim < 128 etc.)


# ----------------------------- linear projection -----------------------------
def _linear_kernel(x_ref, w_ref, b_ref, o_ref, acc_ref):
    # x: (tm, tk) bf16, w: (tk, tn) bf16, b: (1, tn) f32 -> o: (tm, tn)
    kk = pl.program_id(2)

    @pl.when(kk == 0)
    def _init():
        acc_ref[...] = jnp.zeros_like(acc_ref)

    acc_ref[...] += jnp.dot(x_ref[...], w_ref[...],
                            preferred_element_type=jnp.float32)

    @pl.when(kk == pl.num_programs(2) - 1)
    def _finalize():
        o_ref[...] = (acc_ref[...] + b_ref[...]).astype(o_ref.dtype)


def pallas_linear(x2d, w, b, *, out_dtype=None,
                  tm_pref=512, tn_pref=512, tk_pref=512):
    """y = x2d @ w + b  (w is (K, N), i.e. already transposed vs torch weight).

    Grid (M, N, K) with K LAST ("arbitrary"); f32 accumulator scratch; M/N
    "parallel" for megacore.  bf16 operands, f32 accumulation.
    """
    M, K = x2d.shape
    K2, N = w.shape
    assert K == K2
    if out_dtype is None:
        out_dtype = x2d.dtype
    tm = _pick_sub_tile(M, tm_pref)
    tn = _pick_lane_tile(N, tn_pref)
    tk = _pick_lane_tile(K, tk_pref)       # K is x's lane axis -> 128-aligned
    grid = (M // tm, N // tn, K // tk)
    return pl.pallas_call(
        _linear_kernel,
        out_shape=jax.ShapeDtypeStruct((M, N), out_dtype),
        grid=grid,
        in_specs=[
            pl.BlockSpec((tm, tk), lambda i, j, k: (i, k)),
            pl.BlockSpec((tk, tn), lambda i, j, k: (k, j)),
            pl.BlockSpec((1, tn), lambda i, j, k: (0, j)),
        ],
        out_specs=pl.BlockSpec((tm, tn), lambda i, j, k: (i, j)),
        scratch_shapes=[pltpu.VMEM((tm, tn), jnp.float32)],
        compiler_params=pltpu.CompilerParams(
            dimension_semantics=("parallel", "parallel", "arbitrary")),
    )(x2d, w, b.astype(jnp.float32).reshape(1, N))


# --------------------------- attention core kernel ----------------------------
def _attn_kernel(q_ref, k_ref, v_ref, o_ref, m_sc, l_sc, acc_sc, *,
                 causal, hpg, d, tq, tk):
    # Blocks are (1, tq|tk, gw) with gw = hpg * d.  q is pre-scaled (scale
    # folded into the q projection weights).
    ki = pl.program_id(3)

    @pl.when(ki == 0)
    def _init():
        m_sc[...] = jnp.full_like(m_sc, -jnp.inf)
        l_sc[...] = jnp.zeros_like(l_sc)
        acc_sc[...] = jnp.zeros_like(acc_sc)

    def _tile_body():
        q_blk = q_ref[0]                                  # (tq, gw) bf16
        k_blk = k_ref[0]                                  # (tk, gw) bf16
        v_blk = v_ref[0]                                  # (tk, gw) bf16

        if causal:
            q0 = pl.program_id(2) * tq
            k0 = ki * tk
            row = lax.broadcasted_iota(jnp.int32, (tq, tk), 0) + q0
            col = lax.broadcasted_iota(jnp.int32, (tq, tk), 1) + k0
            mask_value = -jnp.finfo(jnp.float32).max       # torch max_neg_value
            bias = jnp.where(col > row, mask_value, 0.0).astype(jnp.float32)

        # Load running statistics ONCE per kv tile; update in registers.
        m_prev = m_sc[...]                                # (tq, hpg) f32
        l_prev = l_sc[...]                                # (tq, hpg) f32
        acc_prev = acc_sc[...]                            # (tq, gw)  f32

        m_cols, l_cols, acc_parts = [], [], []
        for h in range(hpg):                              # unrolled, small hpg
            lo = h * d
            # scores: contract last dims of both operands (no explicit k.T).
            s = lax.dot_general(q_blk[:, lo:lo + d], k_blk[:, lo:lo + d],
                                (((1,), (1,)), ((), ())),
                                preferred_element_type=jnp.float32)  # (tq, tk)
            if causal:
                s = s + bias

            mp = m_prev[:, h:h + 1]                       # (tq, 1)
            mn = jnp.maximum(mp, jnp.max(s, axis=-1, keepdims=True))
            alpha = jnp.exp(mp - mn)
            p = jnp.exp(s - mn)                           # (tq, tk) f32
            l_cols.append(alpha * l_prev[:, h:h + 1]
                          + jnp.sum(p, axis=-1, keepdims=True))
            pv = jnp.dot(p.astype(v_blk.dtype), v_blk[:, lo:lo + d],
                         preferred_element_type=jnp.float32)          # (tq, d)
            acc_parts.append(alpha * acc_prev[:, lo:lo + d] + pv)
            m_cols.append(mn)

        # Single full-width store per scratch (no per-head masked writes).
        m_sc[...] = jnp.concatenate(m_cols, axis=-1) if hpg > 1 else m_cols[0]
        l_sc[...] = jnp.concatenate(l_cols, axis=-1) if hpg > 1 else l_cols[0]
        acc_sc[...] = (jnp.concatenate(acc_parts, axis=-1)
                       if hpg > 1 else acc_parts[0])

    if causal:
        # Skip kv tiles that are entirely above the diagonal.
        @pl.when(ki * tk <= pl.program_id(2) * tq + (tq - 1))
        def _run():
            _tile_body()
    else:
        _tile_body()

    @pl.when(ki == pl.num_programs(3) - 1)
    def _finalize():
        acc = acc_sc[...]
        inv = pl.reciprocal(l_sc[...], approx=True)       # (tq, hpg), EUP slot
        parts = [acc[:, h * d:(h + 1) * d] * inv[:, h:h + 1]
                 for h in range(hpg)]
        out = jnp.concatenate(parts, axis=-1) if hpg > 1 else parts[0]
        o_ref[0] = out.astype(o_ref.dtype)                # one lane-dense store


def pallas_attention_core(qkv, dim, heads, causal=False, *,
                          tq_pref=128, tk_pref=512):
    """qkv: (b, n, 3*dim) packed [q | k | v], q already scaled.
    Returns (b, n, dim) attention output (same packed h*d layout, no head
    transposes anywhere)."""
    b, n, three_dim = qkv.shape
    assert three_dim == 3 * dim
    d = dim // heads
    gw = _head_group_width(dim, d)
    hpg = gw // d
    num_groups = dim // gw

    tq = _pick_sub_tile(n, tq_pref)
    tk = _pick_sub_tile(n, tk_pref)

    kernel = functools.partial(_attn_kernel, causal=causal, hpg=hpg, d=d,
                               tq=tq, tk=tk)

    grid = (b, num_groups, n // tq, n // tk)               # kv axis last
    out_shape = jax.ShapeDtypeStruct((b, n, dim), qkv.dtype)
    out_spec = pl.BlockSpec((1, tq, gw), lambda bi, g, qi, ki: (bi, qi, g))
    scratch = [
        pltpu.VMEM((tq, hpg), jnp.float32),                # running max m
        pltpu.VMEM((tq, hpg), jnp.float32),                # running denom l
        pltpu.VMEM((tq, gw), jnp.float32),                 # accumulator
    ]
    cparams = pltpu.CompilerParams(
        dimension_semantics=("parallel", "parallel", "parallel", "arbitrary"))

    if gw % 128 == 0:
        # Read q/k/v straight out of the packed qkv buffer: the last-axis block
        # index in the index_map selects {q, k, v} x head-group, so there are
        # no XLA slice copies of the fused activation in HBM.
        goff = dim // gw
        in_specs = [
            pl.BlockSpec((1, tq, gw), lambda bi, g, qi, ki: (bi, qi, g)),
            pl.BlockSpec((1, tk, gw), lambda bi, g, qi, ki: (bi, ki, goff + g)),
            pl.BlockSpec((1, tk, gw),
                         lambda bi, g, qi, ki: (bi, ki, 2 * goff + g)),
        ]
        operands = (qkv, qkv, qkv)
    else:
        # gw == dim < 128 (or non-128-aligned): blocks must span the full last
        # dim of their array, so split q/k/v in the wrapper (tiny tensors in
        # this regime, so the extra copies are negligible).
        q = qkv[..., :dim]
        k = qkv[..., dim:2 * dim]
        v = qkv[..., 2 * dim:]
        in_specs = [
            pl.BlockSpec((1, tq, gw), lambda bi, g, qi, ki: (bi, qi, g)),
            pl.BlockSpec((1, tk, gw), lambda bi, g, qi, ki: (bi, ki, g)),
            pl.BlockSpec((1, tk, gw), lambda bi, g, qi, ki: (bi, ki, g)),
        ]
        operands = (q, k, v)

    return pl.pallas_call(
        kernel, out_shape=out_shape, grid=grid,
        in_specs=in_specs, out_specs=out_spec,
        scratch_shapes=scratch, compiler_params=cparams)(*operands)


# -------------------------------- full module ---------------------------------
def prepare_attention_params(params, heads, compute_dtype=jnp.bfloat16):
    """One-time parameter prep: fuse wq|wkv, fold the attention scale into the
    q projection, cast weights to the compute dtype (biases stay f32)."""
    dim = params["wq"].shape[0]
    dim_head = dim // heads
    scale = dim_head ** -0.5
    w_qkv = jnp.concatenate([params["wq"] * scale, params["wkv"]], axis=1)
    b_qkv = jnp.concatenate([params["bq"] * scale, params["bkv"]], axis=0)
    return {
        "w_qkv": w_qkv.astype(compute_dtype),              # (dim, 3*dim)
        "b_qkv": b_qkv.astype(jnp.float32),                # (3*dim,)
        "wo": params["wo"].astype(compute_dtype),          # (dim, dim)
        "bo": params["bo"].astype(jnp.float32),            # (dim,)
        "dim": dim,
        "heads": heads,
    }


def attention_forward(x, prepared, causal=False, compute_dtype=jnp.bfloat16):
    """Equivalent of Attention.forward(x) with default arguments.
    bf16 operands / f32 accumulation internally; output in x.dtype."""
    b, n, dim = x.shape
    assert dim == prepared["dim"]
    heads = prepared["heads"]

    x2d = x.reshape(b * n, dim).astype(compute_dtype)

    # Fused (pre-scaled) Q/KV projection: one tiled matmul, one HBM pass.
    qkv = pallas_linear(x2d, prepared["w_qkv"], prepared["b_qkv"],
                        out_dtype=compute_dtype).reshape(b, n, 3 * dim)

    # Flash-style attention core in the packed (b, n, h*d) layout.
    o = pallas_attention_core(qkv, dim, heads, causal=causal)

    # Output projection, emitted in the module's output dtype.
    out = pallas_linear(o.reshape(b * n, dim), prepared["wo"], prepared["bo"],
                        out_dtype=x.dtype)
    return out.reshape(b, n, dim)


# ------------------------------ reference (JAX) --------------------------------
def attention_reference(x, params, heads, causal=False):
    b, n, dim = x.shape
    dim_head = dim // heads
    scale = dim_head ** -0.5
    q = x @ params["wq"] + params["bq"]
    kv = x @ params["wkv"] + params["bkv"]
    k, v = kv[..., :dim], kv[..., dim:]

    def to_heads(t):
        return t.reshape(b, n, heads, dim_head).transpose(0, 2, 1, 3)

    q, k, v = to_heads(q), to_heads(k), to_heads(v)
    dots = jnp.einsum("bhid,bhjd->bhij", q, k) * scale
    if causal:
        mask = jnp.triu(jnp.ones((n, n), bool), 1)
        dots = jnp.where(mask, -jnp.finfo(dots.dtype).max, dots)
    attn = jax.nn.softmax(dots, axis=-1)
    out = jnp.einsum("bhij,bhjd->bhid", attn, v)
    out = out.transpose(0, 2, 1, 3).reshape(b, n, dim)
    return out @ params["wo"] + params["bo"]


# ------------------------------------ main -------------------------------------
if __name__ == "__main__":
    batch, seq, dim, heads = 2, 8, 32, 8
    causal = False  # module default

    key = jax.random.PRNGKey(0)
    kx, kq, kkv, ko, kbq, kbkv, kbo = jax.random.split(key, 7)

    x = jax.random.normal(kx, (batch, seq, dim), jnp.float32)

    # nn.Linear weights stored pre-transposed as (in, out) so y = x @ w + b
    params = {
        "wq": jax.random.normal(kq, (dim, dim), jnp.float32) * 0.02,
        "bq": jax.random.normal(kbq, (dim,), jnp.float32) * 0.02,
        "wkv": jax.random.normal(kkv, (dim, 2 * dim), jnp.float32) * 0.02,
        "bkv": jax.random.normal(kbkv, (2 * dim,), jnp.float32) * 0.02,
        "wo": jax.random.normal(ko, (dim, dim), jnp.float32) * 0.02,
        "bo": jax.random.normal(kbo, (dim,), jnp.float32) * 0.02,
    }

    prepared = prepare_attention_params(params, heads)
    out = attention_forward(x, prepared, causal=causal)
    out = jax.block_until_ready(out)

    ref = attention_reference(x, params, heads, causal=causal)
    assert out.shape == (batch, seq, dim)
    assert out.dtype == x.dtype
    # bf16 operands with f32 accumulation + EUP approx reciprocal for the
    # softmax denominator -> compare against the f32 reference with a loose
    # (bf16-level) tolerance.
    assert jnp.allclose(out, ref, atol=2e-2, rtol=2e-2), \
        "mismatch vs JAX reference"

    print("KERNEL_OK")
</pallas_src>

<mosaic_0001>
module attributes {stable_mosaic.version = 11 : i64} {
  func.func @_linear_kernel(%arg0: i32, %arg1: i32, %arg2: i32, %arg3: memref<16x32xbf16, #tpu.memory_space<vmem>>, %arg4: memref<32x96xbf16, #tpu.memory_space<vmem>>, %arg5: memref<1x96xf32, #tpu.memory_space<vmem>>, %arg6: memref<16x96xbf16, #tpu.memory_space<vmem>>, %arg7: memref<16x96xf32, #tpu.memory_space<vmem>>) attributes {dimension_semantics = [#tpu.dimension_semantics<parallel>, #tpu.dimension_semantics<parallel>, #tpu.dimension_semantics<arbitrary>], iteration_bounds = array<i64: 1, 1, 1>, scalar_prefetch = 0 : i64, scratch_operands = 1 : i64, tpu.core_type = #tpu.core_type<tc>, window_params = [{transform_indices = @transform_0, window_bounds = array<i64: 16, 32>}, {transform_indices = @transform_1, window_bounds = array<i64: 32, 96>}, {transform_indices = @transform_2, window_bounds = array<i64: 1, 96>}, {transform_indices = @transform_3, window_bounds = array<i64: 16, 96>}]} {
    %c0_i32 = arith.constant 0 : i32
    %0 = arith.cmpi eq, %arg2, %c0_i32 : i32
    %1 = arith.extui %0 : i1 to i32
    %c0_i32_0 = arith.constant 0 : i32
    %2 = arith.cmpi ne, %1, %c0_i32_0 : i32
    scf.if %2 {
      %cst_10 = arith.constant 0.000000e+00 : f32
      %12 = vector.broadcast %cst_10 : f32 to vector<16x96xf32>
      %c0_11 = arith.constant 0 : index
      %c0_12 = arith.constant 0 : index
      %13 = vector.load %arg7[%c0_11, %c0_12] : memref<16x96xf32, #tpu.memory_space<vmem>>, vector<16x96xf32>
      tpu.vector_store %arg7[%c0_11, %c0_12], %12 {strides = array<i32>} : memref<16x96xf32, #tpu.memory_space<vmem>>, vector<16x96xf32>,
    } else {
    }
    %c0 = arith.constant 0 : index
    %c0_1 = arith.constant 0 : index
    %3 = vector.load %arg7[%c0, %c0_1] : memref<16x96xf32, #tpu.memory_space<vmem>>, vector<16x96xf32>
    %c0_2 = arith.constant 0 : index
    %c0_3 = arith.constant 0 : index
    %4 = vector.load %arg3[%c0_2, %c0_3] : memref<16x32xbf16, #tpu.memory_space<vmem>>, vector<16x32xbf16>
    %c0_4 = arith.constant 0 : index
    %c0_5 = arith.constant 0 : index
    %5 = vector.load %arg4[%c0_4, %c0_5] : memref<32x96xbf16, #tpu.memory_space<vmem>>, vector<32x96xbf16>
    %cst = arith.constant dense<0.000000e+00> : vector<16x96xf32>
    %6 = tpu.matmul %4, %5, %cst {dimension_numbers = #tpu.dot_dimension_numbers<[1], [0], [0], [1], [0, 0, 1, 1], [], []>} : vector<16x32xbf16>, vector<32x96xbf16>, vector<16x96xf32> -> vector<16x96xf32>
    %7 = arith.addf %3, %6 : vector<16x96xf32>
    %c0_6 = arith.constant 0 : index
    %c0_7 = arith.constant 0 : index
    %8 = vector.load %arg7[%c0_6, %c0_7] : memref<16x96xf32, #tpu.memory_space<vmem>>, vector<16x96xf32>
    tpu.vector_store %arg7[%c0_6, %c0_7], %7 {strides = array<i32>} : memref<16x96xf32, #tpu.memory_space<vmem>>, vector<16x96xf32>,
    %c0_i32_8 = arith.constant 0 : i32
    %9 = arith.cmpi eq, %arg2, %c0_i32_8 : i32
    %10 = arith.extui %9 : i1 to i32
    %c0_i32_9 = arith.constant 0 : i32
    %11 = arith.cmpi ne, %10, %c0_i32_9 : i32
    scf.if %11 {
      %c0_10 = arith.constant 0 : index
      %c0_11 = arith.constant 0 : index
      %12 = vector.load %arg7[%c0_10, %c0_11] : memref<16x96xf32, #tpu.memory_space<vmem>>, vector<16x96xf32>
      %c0_12 = arith.constant 0 : index
      %c0_13 = arith.constant 0 : index
      %13 = vector.load %arg5[%c0_12, %c0_13] : memref<1x96xf32, #tpu.memory_space<vmem>>, vector<1x96xf32>
      %14 = vector.broadcast %13 : vector<1x96xf32> to vector<16x96xf32>
      %15 = arith.addf %12, %14 : vector<16x96xf32>
      %16 = arith.truncf %15 : vector<16x96xf32> to vector<16x96xbf16>
      %c0_14 = arith.constant 0 : index
      %c0_15 = arith.constant 0 : index
      %17 = vector.load %arg6[%c0_14, %c0_15] : memref<16x96xbf16, #tpu.memory_space<vmem>>, vector<16x96xbf16>
      tpu.vector_store %arg6[%c0_14, %c0_15], %16 {strides = array<i32>} : memref<16x96xbf16, #tpu.memory_space<vmem>>, vector<16x96xbf16>,
    } else {
    }
    return
  }
  func.func @transform_0(%arg0: i32, %arg1: i32, %arg2: i32) -> (i32, i32) {
    %c0_i32 = arith.constant 0 : i32
    return %arg0, %arg2 : i32, i32
  }
  func.func @transform_1(%arg0: i32, %arg1: i32, %arg2: i32) -> (i32, i32) {
    %c0_i32 = arith.constant 0 : i32
    return %arg2, %arg1 : i32, i32
  }
  func.func @transform_2(%arg0: i32, %arg1: i32, %arg2: i32) -> (i32, i32) {
    %c0_i32 = arith.constant 0 : i32
    %c0_i32_0 = arith.constant 0 : i32
    return %c0_i32, %arg1 : i32, i32
  }
  func.func @transform_3(%arg0: i32, %arg1: i32, %arg2: i32) -> (i32, i32) {
    %c0_i32 = arith.constant 0 : i32
    return %arg0, %arg1 : i32, i32
  }
}

</mosaic_0001>

<bundles_post_ra>
// kernel: tpu_custom_call.1
= control target key start
LH: loop header
LB: loop body
LE: loop exit
PB: predicated region body
PF: predicated region fallthrough
CT: control target
= control target key end

     0   :  { %8 = vsyncpa [#allocation4], 0  ;;  %s317_s0 = inlined_call_operand.hbm [shape: bf16[16,32], index: 0, kind: input, shape index: {}]   ;;  %s318_s1 = inlined_call_operand.hbm [shape: bf16[32,96], index: 1, kind: input, shape index: {}]   ;;  %s319_s2 = inlined_call_operand.vmem [shape: f32[1,96], index: 2, kind: input, shape index: {}]   ;;  %s320_s3 = inlined_call_operand.hbm [shape: bf16[16,96], index: 3, kind: output, shape index: {}]  }
   0x1   :  { %9 = vsyncpa [#allocation7], 0 }
   0x2   :  { %10 = vsyncpa [#allocation5], 0  ;;  %s265_s12 = smov [#allocation3]  }
   0x3   :  { %s16_s13 = sshll.u32 %s265_s12, 4  ;;  %s17_s13 = int_to_ptr.vmem [resolvable:$true] %s16_s13 }
   0x4   :  { %s207_s14 = scalar_lea.vmem %s17_s13, 128  ;;  %p212_p1 = scmp.lt.s32.totalorder %s17_s13, %s17_s13 }
   0x5   :  { %p208_p0 = scmp.ne.s32.totalorder %s17_s13, %s207_s14  ;;  %p213_p2 = scmp.lt.s32.totalorder %s207_s14, %s207_s14 }
   0x7   :  { %p214_p3 = por %p213_p2, %p212_p1 }
   0x9   :  { %p215_p4 = pnand %p214_p3, %p208_p0 }
   0xb   :  { %218 = shalt.err (!%p215_p4)
}
   0xc   :  { %s266_s15 = smov 64   ;;  %s267_s16 = smov 4  }
   0xd   :  { %22 = dma.hbm_to_vmem [thread:$0]  %s317_s0, 128, %s17_s13, [#allocation4], %s266_s15, %s266_s15, %s267_s16  }
   0xe   :  { %s268_s19 = smov [#allocation6]  }
   0xf   :  { %s28_s20 = sshll.u32 %s268_s19, 4  ;;  %s29_s20 = int_to_ptr.vmem [resolvable:$true] %s28_s20 }
  0x10   :  { %s227_s21 = scalar_lea.vmem %s29_s20, 256  ;;  %p232_p6 = scmp.lt.s32.totalorder %s29_s20, %s29_s20 }
  0x11   :  { %p228_p5 = scmp.ne.s32.totalorder %s29_s20, %s227_s21  ;;  %p233_p7 = scmp.lt.s32.totalorder %s227_s21, %s227_s21 }
  0x13   :  { %p234_p8 = por %p233_p7, %p232_p6 }
  0x15   :  { %p235_p9 = pnand %p234_p8, %p228_p5 }
  0x17   :  { %238 = shalt.err (!%p235_p9)
}
  0x18   :  { %34 = dma.hbm_to_vmem [thread:$0]  %s318_s1, 256, %s29_s20, [#allocation7], %s266_s15, %s266_s15, %s267_s16  }
  0x19   :  { %259 = dma.done.wait [#allocation4], 128  }
  0x1a   :  { %260 = vsyncadd [#allocation4], 4294967168 }
  0x1b   :  { %261 = dma.done.wait [#allocation7], 256  }
  0x1c   :  { %262 = vsyncadd [#allocation7], 4294967040  ;;  %vm48_vm0 = vcmask 785408   ;;  %v269_v0 = vmov 0.0   ;;  %vm270_vm1 = vmmov 0   ;;  %v196_v1 = vld [vmem:[#allocation6 + $0x8] sm:$0xff]  }
  0x1d   :  { %49 = vst.msk [vmem:[#allocation2] sm:$0xff] %vm48_vm0, %v269_v0  ;;  %50 = vst.msk [vmem:[#allocation2 + $0x8] sm:$0xff] %vm48_vm0, %v269_v0  ;;  %181 = vmatprep.subr.bf16.mxu0 %v269_v0  ;;  %185 = vmatprep.mubr.msk.bf16.mxu0 %vm270_vm1, %v269_v0  ;;  %v197_v2 = vld [vmem:[#allocation6] sm:$0xff]   ;;  %v198_v3 = vld [vmem:[#allocation3] sm:$0xff]   ;;  %vm76_vm2 = vcmask 261120   ;;  %vm148_vm3 = vcmask 781312  }
  0x1e   :  { %182 = vmatpush3.bf16.msra.mxu0 %v196_v1  ;;  %v173_v12 = vld [vmem:[%s319_s2] ss:$0 sm:$0xff]  ;;  %s271_s24 = smov [#allocation8]  }
  0x1f   :  { %183 = vmatprep.subr.bf16.mxu0 %v269_v0  ;;  %s156_s25 = sshll.u32 %s271_s24, 4  ;;  %s157_s25 = int_to_ptr.vmem [resolvable:$true] %s156_s25 }
  0x20   :  { %s239_s26 = scalar_lea.vmem %s157_s25, 128  ;;  %p244_p11 = scmp.lt.s32.totalorder %s157_s25, %s157_s25 }
  0x21   :  { %p240_p10 = scmp.ne.s32.totalorder %s157_s25, %s239_s26  ;;  %p245_p12 = scmp.lt.s32.totalorder %s239_s26, %s239_s26 }
  0x22   :  { %184 = vmatpush3.bf16.msra.mxu0 %v197_v2 }
  0x23   :  { %p246_p13 = por %p245_p12, %p244_p11 }
  0x24   :  { %v51_v4 = vld [vmem:[#allocation2] sm:$0xff]  ;;  %v52_v8 = vld [vmem:[#allocation2 + $0x8] sm:$0xff] }
  0x25   :  { %186 = vmatmul.mubr.msk.bf16.vlgmr.msra.gmra.mxu0 %vm76_vm2, %v198_v3  ;;  %p247_p0 = pnand %p246_p13, %p240_p10 }
  0xe5   :  { %v114_v5 = vpop.f32.mrf.mxu0 }
  0xe6   :  { %v121_v6 = vadd.f32 %v114_v5, %v51_v4 }
  0xe7   :  { %v187_v7 = vpop.f32.mrf.mxu0 }
  0xe8   :  { %124 = vst.msk [vmem:[#allocation2] sm:$0xff] %vm48_vm0, %v121_v6 }
  0xe9   :  { %v117_v9 = vpop.f32.mrf.mxu0 }
  0xea   :  { %v122_v10 = vadd.f32 %v117_v9, %v52_v8 }
  0xeb   :  { %v188_v11 = vpop.f32.mrf.mxu0 }
  0xec   :  { %125 = vst.msk [vmem:[#allocation2 + $0x8] sm:$0xff] %vm48_vm0, %v122_v10 }
  0xef   :  { %v129_v13 = vld [vmem:[#allocation2] sm:$0xff] }
  0xf0   :  { %v138_v14 = vadd.f32 %v173_v12, %v129_v13 }
  0xf2   :  { %v176_v15 = vpack.c.bf16 %v138_v14, %v138_v14 }
  0xf3   :  { %v130_v16 = vld [vmem:[#allocation2 + $0x8] sm:$0xff] }
  0xf4   :  { %v139_v17 = vadd.f32 %v173_v12, %v130_v16  ;;  %149 = vst.msk [vmem:[#allocation8] sm:$0xf] %vm148_vm3, %v176_v15 }
  0xf6   :  { %v177_v18 = vpack.c.bf16 %v139_v17, %v139_v17 }
  0xf8   :  { %150 = vst.msk [vmem:[#allocation8 + $0x4] sm:$0xf] %vm148_vm3, %v177_v18 }
  0xf9   :  { %250 = shalt.err (!%p247_p0)
}
  0xfa   :  { %162 = dma.vmem_to_hbm [thread:$0]  %s157_s25, 128, %s320_s3, [#allocation5], %s266_s15, %s266_s15, %s267_s16  }
  0xfb   :  { %263 = dma.done.wait [#allocation5], 128  }
  0xfc   :  { %264 = vsyncadd [#allocation5], 4294967168 }
  0xfd   :  { %166 = vsyncpa [#allocation4], 1 }
  0xfe   :  { %167 = vsyncpa [#allocation7], 1 }
  0xff   :  { %168 = vsyncpa [#allocation5], 1 }

</bundles_post_ra>
